<compile_context>
chip_gen: v7x
topology: tpu7x:2x2x1
jax: 0.10.0
libtpu: 0.0.40
codegen_flags: <defaults>
</compile_context>

<pallas_src>
import functools

import jax
import jax.numpy as jnp
from jax.experimental import pallas as pl
from jax.experimental.pallas import tpu as pltpu

_NEG_SLOPE = 0.01   # nn.LeakyReLU default
_LANE = 128
_SUBLANE = 8


def _round_up(n, m):
    return ((n + m - 1) // m) * m


def _leaky_relu(x, slope=_NEG_SLOPE):
    return jnp.where(x > 0, x, slope * x)


def mlp_kernel(x_ref,
               w1_ref, b1_ref,
               w2_ref, b2_ref,
               w3_ref, b3_ref,
               w4_ref, b4_ref,
               w5_ref, b5_ref,
               o_ref):
    """One batch tile.

    x_ref: (TB, 208) f32, cast to bf16 in-kernel before the first dot.
    w*_ref: bf16 [in, out] (w5 out-dim zero-padded to 128 for lane-dense
    stores).  b*_ref: f32 [1, out].  All dots feed the MXU with bf16 inputs
    and f32 accumulation; bias-add / LeakyReLU / tanh stay f32 on VPU/EUP.
    """
    x = x_ref[...].astype(jnp.bfloat16)
    h = jnp.dot(x, w1_ref[...], preferred_element_type=jnp.float32)
    h = _leaky_relu(h + b1_ref[...])

    h = jnp.dot(h.astype(jnp.bfloat16), w2_ref[...],
                preferred_element_type=jnp.float32)
    h = _leaky_relu(h + b2_ref[...])

    h = jnp.dot(h.astype(jnp.bfloat16), w3_ref[...],
                preferred_element_type=jnp.float32)
    h = _leaky_relu(h + b3_ref[...])

    h = jnp.dot(h.astype(jnp.bfloat16), w4_ref[...],
                preferred_element_type=jnp.float32)
    h = _leaky_relu(h + b4_ref[...])

    h = jnp.dot(h.astype(jnp.bfloat16), w5_ref[...],
                preferred_element_type=jnp.float32)
    h = h + b5_ref[...]
    # Dropout (eval mode) = identity.
    # TODO(synk): train-mode dropout (Bernoulli mask + 1/(1-p) scale) via
    # pltpu.prng_seed / pltpu.stateful_bernoulli if ever required.
    o_ref[...] = (jnp.tanh(h) * 5.0).astype(o_ref.dtype)


def prepare_params(params):
    """One-time weight/bias prep (call once, reuse across forward calls).

    Weights are stored as bf16 [in, out] (already transposed for x @ W);
    w5/b5 out-dim is zero-padded z_dim -> 128 so the kernel's output slab is
    lane-dense.  The wrapper strips the pad.
    """
    z_dim = params["w5"].shape[1]
    zp = _round_up(z_dim, _LANE)

    prep = {}
    for i in range(1, 5):
        prep[f"w{i}"] = params[f"w{i}"].astype(jnp.bfloat16)
        prep[f"b{i}"] = params[f"b{i}"].astype(jnp.float32)
    prep["w5"] = jnp.zeros((params["w5"].shape[0], zp), jnp.bfloat16).at[
        :, :z_dim].set(params["w5"].astype(jnp.bfloat16))
    prep["b5"] = jnp.zeros((1, zp), jnp.float32).at[
        :, :z_dim].set(params["b5"].astype(jnp.float32))
    return prep


def _choose_tile(batch, tb):
    """Batch tile: multiple of 8 (or the full batch when B < 8), capped at tb,
    and clamped so the 1-D grid has >= 2 steps whenever the batch allows it
    (v7x has 2 TensorCores; weights are VMEM-resident per core anyway)."""
    if batch <= _SUBLANE:
        return batch                     # full-dim block: always legal
    tile = max(_SUBLANE, _round_up(min(tb, batch), _SUBLANE))
    tile = min(tile, _round_up(-(-batch // 2), _SUBLANE))
    return tile


@functools.partial(jax.jit, static_argnames=("z_dim", "tb"))
def mlp_forward(x, prep, *, z_dim=16, tb=1024):
    """x: [B, 208] float32; prep: output of prepare_params(). -> [B, z_dim] f32."""
    B, F = x.shape
    zp = prep["w5"].shape[1]             # z_dim padded to a 128-lane multiple

    TB = _choose_tile(B, tb)
    grid = (pl.cdiv(B, TB),)

    args = (x,
            prep["w1"], prep["b1"], prep["w2"], prep["b2"],
            prep["w3"], prep["b3"], prep["w4"], prep["b4"],
            prep["w5"], prep["b5"])

    # Weights/biases get a constant index_map -> stay VMEM-resident across the
    # batch grid (Pallas skips the re-DMA); only the x tile and out tile are
    # streamed and double-buffered.
    def resident(arr):
        return pl.BlockSpec(arr.shape, lambda i: (0, 0))

    in_specs = [pl.BlockSpec((TB, F), lambda i: (i, 0))]   # F == full last dim
    in_specs += [resident(a) for a in args[1:]]

    out = pl.pallas_call(
        mlp_kernel,
        out_shape=jax.ShapeDtypeStruct((B, zp), jnp.bfloat16),
        grid=grid,
        in_specs=in_specs,
        out_specs=pl.BlockSpec((TB, zp), lambda i: (i, 0)),
        compiler_params=pltpu.CompilerParams(
            dimension_semantics=("parallel",)),
    )(*args)

    return out[:, :z_dim].astype(jnp.float32)


def init_params(key, input_dim=208, z_dim=16):
    """Init mimicking nn.Linear's U(-1/sqrt(in), 1/sqrt(in)).

    Weights are stored as [in, out] (already transposed for x @ W)."""
    dims = [(input_dim, 256), (256, 128), (128, 64), (64, 32), (32, z_dim)]
    params = {}
    for i, (din, dout) in enumerate(dims, start=1):
        key, kw, kb = jax.random.split(key, 3)
        bound = 1.0 / jnp.sqrt(din)
        params[f"w{i}"] = jax.random.uniform(
            kw, (din, dout), jnp.float32, minval=-bound, maxval=bound)
        params[f"b{i}"] = jax.random.uniform(
            kb, (1, dout), jnp.float32, minval=-bound, maxval=bound)
    return params


def mlp_reference(x, params):
    """Pure-JAX reference mirroring the kernel's bf16-MXU / f32-acc numerics
    (including the bf16 output round-trip)."""
    h = x
    for i in range(1, 6):
        w = params[f"w{i}"].astype(jnp.bfloat16)
        h = jnp.dot(h.astype(jnp.bfloat16), w,
                    preferred_element_type=jnp.float32) + params[f"b{i}"]
        if i < 5:
            h = jnp.where(h > 0, h, _NEG_SLOPE * h)
    out = jnp.tanh(h) * 5.0
    return out.astype(jnp.bfloat16).astype(jnp.float32)


if __name__ == "__main__":
    key = jax.random.PRNGKey(0)
    key, kx = jax.random.split(key)

    B, INPUT, Z = 8, 208, 16
    x = jax.random.normal(kx, (B, INPUT), jnp.float32)
    params = init_params(key, input_dim=INPUT, z_dim=Z)
    prep = prepare_params(params)   # one-time weight prep

    out = jax.block_until_ready(mlp_forward(x, prep, z_dim=Z))
    ref = mlp_reference(x, params)
    assert out.shape == (B, Z)
    assert jnp.allclose(out, ref, atol=2e-2, rtol=2e-2), "mismatch vs reference (B=8)"

    # Multi-block grid + non-divisible batch (last block partially out of bounds).
    key, kx2 = jax.random.split(key)
    B2 = 200   # tb=64 -> TB=64, grid=4, rows 200..255 of the last block masked
    x2 = jax.random.normal(kx2, (B2, INPUT), jnp.float32)
    out2 = jax.block_until_ready(mlp_forward(x2, prep, z_dim=Z, tb=64))
    ref2 = mlp_reference(x2, params)
    assert out2.shape == (B2, Z)
    assert jnp.allclose(out2, ref2, atol=2e-2, rtol=2e-2), "mismatch vs reference (B=200)"

    print("KERNEL_OK")
</pallas_src>

<mosaic_0001>
module attributes {stable_mosaic.version = 11 : i64} {
  func.func @mlp_kernel(%arg0: i32, %arg1: memref<8x208xf32, #tpu.memory_space<vmem>>, %arg2: memref<208x256xbf16, #tpu.memory_space<vmem>>, %arg3: memref<1x256xf32, #tpu.memory_space<vmem>>, %arg4: memref<256x128xbf16, #tpu.memory_space<vmem>>, %arg5: memref<1x128xf32, #tpu.memory_space<vmem>>, %arg6: memref<128x64xbf16, #tpu.memory_space<vmem>>, %arg7: memref<1x64xf32, #tpu.memory_space<vmem>>, %arg8: memref<64x32xbf16, #tpu.memory_space<vmem>>, %arg9: memref<1x32xf32, #tpu.memory_space<vmem>>, %arg10: memref<32x128xbf16, #tpu.memory_space<vmem>>, %arg11: memref<1x128xf32, #tpu.memory_space<vmem>>, %arg12: memref<8x128xbf16, #tpu.memory_space<vmem>>) attributes {dimension_semantics = [#tpu.dimension_semantics<parallel>], iteration_bounds = array<i64: 1>, scalar_prefetch = 0 : i64, scratch_operands = 0 : i64, tpu.core_type = #tpu.core_type<tc>, window_params = [{transform_indices = @transform_0, window_bounds = array<i64: 8, 208>}, {pipeline_mode = #tpu.pipeline_mode<synchronous>, transform_indices = @transform_1, window_bounds = array<i64: 208, 256>}, {pipeline_mode = #tpu.pipeline_mode<synchronous>, transform_indices = @transform_2, window_bounds = array<i64: 1, 256>}, {pipeline_mode = #tpu.pipeline_mode<synchronous>, transform_indices = @transform_3, window_bounds = array<i64: 256, 128>}, {pipeline_mode = #tpu.pipeline_mode<synchronous>, transform_indices = @transform_4, window_bounds = array<i64: 1, 128>}, {pipeline_mode = #tpu.pipeline_mode<synchronous>, transform_indices = @transform_5, window_bounds = array<i64: 128, 64>}, {pipeline_mode = #tpu.pipeline_mode<synchronous>, transform_indices = @transform_6, window_bounds = array<i64: 1, 64>}, {pipeline_mode = #tpu.pipeline_mode<synchronous>, transform_indices = @transform_7, window_bounds = array<i64: 64, 32>}, {pipeline_mode = #tpu.pipeline_mode<synchronous>, transform_indices = @transform_8, window_bounds = array<i64: 1, 32>}, {pipeline_mode = #tpu.pipeline_mode<synchronous>, transform_indices = @transform_9, window_bounds = array<i64: 32, 128>}, {pipeline_mode = #tpu.pipeline_mode<synchronous>, transform_indices = @transform_10, window_bounds = array<i64: 1, 128>}, {transform_indices = @transform_11, window_bounds = array<i64: 8, 128>}]} {
    %c0 = arith.constant 0 : index
    %c0_0 = arith.constant 0 : index
    %0 = vector.load %arg1[%c0, %c0_0] : memref<8x208xf32, #tpu.memory_space<vmem>>, vector<8x208xf32>
    %1 = arith.truncf %0 : vector<8x208xf32> to vector<8x208xbf16>
    %c0_1 = arith.constant 0 : index
    %c0_2 = arith.constant 0 : index
    %2 = vector.load %arg2[%c0_1, %c0_2] : memref<208x256xbf16, #tpu.memory_space<vmem>>, vector<208x256xbf16>
    %cst = arith.constant dense<0.000000e+00> : vector<8x256xf32>
    %3 = tpu.matmul %1, %2, %cst {dimension_numbers = #tpu.dot_dimension_numbers<[1], [0], [0], [1], [0, 0, 1, 1], [], []>} : vector<8x208xbf16>, vector<208x256xbf16>, vector<8x256xf32> -> vector<8x256xf32>
    %c0_3 = arith.constant 0 : index
    %c0_4 = arith.constant 0 : index
    %4 = vector.load %arg3[%c0_3, %c0_4] : memref<1x256xf32, #tpu.memory_space<vmem>>, vector<1x256xf32>
    %5 = vector.broadcast %4 : vector<1x256xf32> to vector<8x256xf32>
    %6 = arith.addf %3, %5 : vector<8x256xf32>
    %cst_5 = arith.constant 0.000000e+00 : f32
    %7 = vector.broadcast %cst_5 : f32 to vector<8x256xf32>
    %8 = arith.cmpf ogt, %6, %7 : vector<8x256xf32>
    %cst_6 = arith.constant 0.00999999977 : f32
    %9 = vector.broadcast %cst_6 : f32 to vector<8x256xf32>
    %10 = arith.mulf %9, %6 : vector<8x256xf32>
    %11 = arith.select %8, %6, %10 : vector<8x256xi1>, vector<8x256xf32>
    %12 = arith.truncf %11 : vector<8x256xf32> to vector<8x256xbf16>
    %c0_7 = arith.constant 0 : index
    %c0_8 = arith.constant 0 : index
    %13 = vector.load %arg4[%c0_7, %c0_8] : memref<256x128xbf16, #tpu.memory_space<vmem>>, vector<256x128xbf16>
    %cst_9 = arith.constant dense<0.000000e+00> : vector<8x128xf32>
    %14 = tpu.matmul %12, %13, %cst_9 {dimension_numbers = #tpu.dot_dimension_numbers<[1], [0], [0], [1], [0, 0, 1, 1], [], []>} : vector<8x256xbf16>, vector<256x128xbf16>, vector<8x128xf32> -> vector<8x128xf32>
    %c0_10 = arith.constant 0 : index
    %c0_11 = arith.constant 0 : index
    %15 = vector.load %arg5[%c0_10, %c0_11] : memref<1x128xf32, #tpu.memory_space<vmem>>, vector<1x128xf32>
    %16 = vector.broadcast %15 : vector<1x128xf32> to vector<8x128xf32>
    %17 = arith.addf %14, %16 : vector<8x128xf32>
    %cst_12 = arith.constant 0.000000e+00 : f32
    %18 = vector.broadcast %cst_12 : f32 to vector<8x128xf32>
    %19 = arith.cmpf ogt, %17, %18 : vector<8x128xf32>
    %cst_13 = arith.constant 0.00999999977 : f32
    %20 = vector.broadcast %cst_13 : f32 to vector<8x128xf32>
    %21 = arith.mulf %20, %17 : vector<8x128xf32>
    %22 = arith.select %19, %17, %21 : vector<8x128xi1>, vector<8x128xf32>
    %23 = arith.truncf %22 : vector<8x128xf32> to vector<8x128xbf16>
    %c0_14 = arith.constant 0 : index
    %c0_15 = arith.constant 0 : index
    %24 = vector.load %arg6[%c0_14, %c0_15] : memref<128x64xbf16, #tpu.memory_space<vmem>>, vector<128x64xbf16>
    %cst_16 = arith.constant dense<0.000000e+00> : vector<8x64xf32>
    %25 = tpu.matmul %23, %24, %cst_16 {dimension_numbers = #tpu.dot_dimension_numbers<[1], [0], [0], [1], [0, 0, 1, 1], [], []>} : vector<8x128xbf16>, vector<128x64xbf16>, vector<8x64xf32> -> vector<8x64xf32>
    %c0_17 = arith.constant 0 : index
    %c0_18 = arith.constant 0 : index
    %26 = vector.load %arg7[%c0_17, %c0_18] : memref<1x64xf32, #tpu.memory_space<vmem>>, vector<1x64xf32>
    %27 = vector.broadcast %26 : vector<1x64xf32> to vector<8x64xf32>
    %28 = arith.addf %25, %27 : vector<8x64xf32>
    %cst_19 = arith.constant 0.000000e+00 : f32
    %29 = vector.broadcast %cst_19 : f32 to vector<8x64xf32>
    %30 = arith.cmpf ogt, %28, %29 : vector<8x64xf32>
    %cst_20 = arith.constant 0.00999999977 : f32
    %31 = vector.broadcast %cst_20 : f32 to vector<8x64xf32>
    %32 = arith.mulf %31, %28 : vector<8x64xf32>
    %33 = arith.select %30, %28, %32 : vector<8x64xi1>, vector<8x64xf32>
    %34 = arith.truncf %33 : vector<8x64xf32> to vector<8x64xbf16>
    %c0_21 = arith.constant 0 : index
    %c0_22 = arith.constant 0 : index
    %35 = vector.load %arg8[%c0_21, %c0_22] : memref<64x32xbf16, #tpu.memory_space<vmem>>, vector<64x32xbf16>
    %cst_23 = arith.constant dense<0.000000e+00> : vector<8x32xf32>
    %36 = tpu.matmul %34, %35, %cst_23 {dimension_numbers = #tpu.dot_dimension_numbers<[1], [0], [0], [1], [0, 0, 1, 1], [], []>} : vector<8x64xbf16>, vector<64x32xbf16>, vector<8x32xf32> -> vector<8x32xf32>
    %c0_24 = arith.constant 0 : index
    %c0_25 = arith.constant 0 : index
    %37 = vector.load %arg9[%c0_24, %c0_25] : memref<1x32xf32, #tpu.memory_space<vmem>>, vector<1x32xf32>
    %38 = vector.broadcast %37 : vector<1x32xf32> to vector<8x32xf32>
    %39 = arith.addf %36, %38 : vector<8x32xf32>
    %cst_26 = arith.constant 0.000000e+00 : f32
    %40 = vector.broadcast %cst_26 : f32 to vector<8x32xf32>
    %41 = arith.cmpf ogt, %39, %40 : vector<8x32xf32>
    %cst_27 = arith.constant 0.00999999977 : f32
    %42 = vector.broadcast %cst_27 : f32 to vector<8x32xf32>
    %43 = arith.mulf %42, %39 : vector<8x32xf32>
    %44 = arith.select %41, %39, %43 : vector<8x32xi1>, vector<8x32xf32>
    %45 = arith.truncf %44 : vector<8x32xf32> to vector<8x32xbf16>
    %c0_28 = arith.constant 0 : index
    %c0_29 = arith.constant 0 : index
    %46 = vector.load %arg10[%c0_28, %c0_29] : memref<32x128xbf16, #tpu.memory_space<vmem>>, vector<32x128xbf16>
    %cst_30 = arith.constant dense<0.000000e+00> : vector<8x128xf32>
    %47 = tpu.matmul %45, %46, %cst_30 {dimension_numbers = #tpu.dot_dimension_numbers<[1], [0], [0], [1], [0, 0, 1, 1], [], []>} : vector<8x32xbf16>, vector<32x128xbf16>, vector<8x128xf32> -> vector<8x128xf32>
    %c0_31 = arith.constant 0 : index
    %c0_32 = arith.constant 0 : index
    %48 = vector.load %arg11[%c0_31, %c0_32] : memref<1x128xf32, #tpu.memory_space<vmem>>, vector<1x128xf32>
    %49 = vector.broadcast %48 : vector<1x128xf32> to vector<8x128xf32>
    %50 = arith.addf %47, %49 : vector<8x128xf32>
    %51 = math.tanh %50 : vector<8x128xf32>
    %cst_33 = arith.constant 5.000000e+00 : f32
    %52 = vector.broadcast %cst_33 : f32 to vector<8x128xf32>
    %53 = arith.mulf %51, %52 : vector<8x128xf32>
    %54 = arith.truncf %53 : vector<8x128xf32> to vector<8x128xbf16>
    %c0_34 = arith.constant 0 : index
    %c0_35 = arith.constant 0 : index
    %55 = vector.load %arg12[%c0_34, %c0_35] : memref<8x128xbf16, #tpu.memory_space<vmem>>, vector<8x128xbf16>
    tpu.vector_store %arg12[%c0_34, %c0_35], %54 {strides = array<i32>} : memref<8x128xbf16, #tpu.memory_space<vmem>>, vector<8x128xbf16>,
    return
  }
  func.func @transform_0(%arg0: i32) -> (i32, i32) {
    %c0_i32 = arith.constant 0 : i32
    %c0_i32_0 = arith.constant 0 : i32
    return %arg0, %c0_i32 : i32, i32
  }
  func.func @transform_1(%arg0: i32) -> (i32, i32) {
    %c0_i32 = arith.constant 0 : i32
    %c0_i32_0 = arith.constant 0 : i32
    %c0_i32_1 = arith.constant 0 : i32
    return %c0_i32, %c0_i32_0 : i32, i32
  }
  func.func @transform_2(%arg0: i32) -> (i32, i32) {
    %c0_i32 = arith.constant 0 : i32
    %c0_i32_0 = arith.constant 0 : i32
    %c0_i32_1 = arith.constant 0 : i32
    return %c0_i32, %c0_i32_0 : i32, i32
  }
  func.func @transform_3(%arg0: i32) -> (i32, i32) {
    %c0_i32 = arith.constant 0 : i32
    %c0_i32_0 = arith.constant 0 : i32
    %c0_i32_1 = arith.constant 0 : i32
    return %c0_i32, %c0_i32_0 : i32, i32
  }
  func.func @transform_4(%arg0: i32) -> (i32, i32) {
    %c0_i32 = arith.constant 0 : i32
    %c0_i32_0 = arith.constant 0 : i32
    %c0_i32_1 = arith.constant 0 : i32
    return %c0_i32, %c0_i32_0 : i32, i32
  }
  func.func @transform_5(%arg0: i32) -> (i32, i32) {
    %c0_i32 = arith.constant 0 : i32
    %c0_i32_0 = arith.constant 0 : i32
    %c0_i32_1 = arith.constant 0 : i32
    return %c0_i32, %c0_i32_0 : i32, i32
  }
  func.func @transform_6(%arg0: i32) -> (i32, i32) {
    %c0_i32 = arith.constant 0 : i32
    %c0_i32_0 = arith.constant 0 : i32
    %c0_i32_1 = arith.constant 0 : i32
    return %c0_i32, %c0_i32_0 : i32, i32
  }
  func.func @transform_7(%arg0: i32) -> (i32, i32) {
    %c0_i32 = arith.constant 0 : i32
    %c0_i32_0 = arith.constant 0 : i32
    %c0_i32_1 = arith.constant 0 : i32
    return %c0_i32, %c0_i32_0 : i32, i32
  }
  func.func @transform_8(%arg0: i32) -> (i32, i32) {
    %c0_i32 = arith.constant 0 : i32
    %c0_i32_0 = arith.constant 0 : i32
    %c0_i32_1 = arith.constant 0 : i32
    return %c0_i32, %c0_i32_0 : i32, i32
  }
  func.func @transform_9(%arg0: i32) -> (i32, i32) {
    %c0_i32 = arith.constant 0 : i32
    %c0_i32_0 = arith.constant 0 : i32
    %c0_i32_1 = arith.constant 0 : i32
    return %c0_i32, %c0_i32_0 : i32, i32
  }
  func.func @transform_10(%arg0: i32) -> (i32, i32) {
    %c0_i32 = arith.constant 0 : i32
    %c0_i32_0 = arith.constant 0 : i32
    %c0_i32_1 = arith.constant 0 : i32
    return %c0_i32, %c0_i32_0 : i32, i32
  }
  func.func @transform_11(%arg0: i32) -> (i32, i32) {
    %c0_i32 = arith.constant 0 : i32
    %c0_i32_0 = arith.constant 0 : i32
    return %arg0, %c0_i32 : i32, i32
  }
}

</mosaic_0001>

<bundles_post_ra>
// kernel: mlp_forward.1
= control target key start
LH: loop header
LB: loop body
LE: loop exit
PB: predicated region body
PF: predicated region fallthrough
CT: control target
= control target key end

     0   :  { %16 = vsyncpa [#allocation3], 0  ;;  %s1464_s0 = inlined_call_operand.hbm [shape: f32[8,208], index: 0, kind: input, shape index: {}]   ;;  %s1465_s1 = inlined_call_operand.hbm [shape: bf16[208,256], index: 1, kind: input, shape index: {}]   ;;  %s1466_s2 = inlined_call_operand.vmem [shape: f32[1,256], index: 2, kind: input, shape index: {}]   ;;  %s1467_s3 = inlined_call_operand.vmem [shape: bf16[256,128], index: 3, kind: input, shape index: {}]   ;;  %s1468_s4 = inlined_call_operand.hbm [shape: f32[1,128], index: 4, kind: input, shape index: {}]   ;;  %s1469_s5 = inlined_call_operand.vmem [shape: bf16[128,64], index: 5, kind: input, shape index: {}]   ;;  %s1470_s6 = inlined_call_operand.hbm [shape: f32[1,64], index: 6, kind: input, shape index: {}]   ;;  %s1471_s7 = inlined_call_operand.vmem [shape: bf16[64,32], index: 7, kind: input, shape index: {}]   ;;  %s1472_s8 = inlined_call_operand.hbm [shape: f32[1,32], index: 8, kind: input, shape index: {}]   ;;  %s1473_s9 = inlined_call_operand.hbm [shape: bf16[32,128], index: 9, kind: input, shape index: {}]   ;;  %s1474_s10 = inlined_call_operand.hbm [shape: f32[1,128], index: 10, kind: input, shape index: {}]   ;;  %s1475_s11 = inlined_call_operand.vmem [shape: bf16[8,128], index: 11, kind: output, shape index: {}]  }
   0x1   :  { %17 = vsyncpa [#allocation5], 0 }
   0x2   :  { %18 = vsyncpa [#allocation8], 0 }
   0x3   :  { %19 = vsyncpa [#allocation11], 0  ;;  %s1197_s17 = smov [#allocation4]   ;;  %s1035_s21 = scalar_lea.hbm %s1465_s1, 3328 }
   0x4   :  { %s35_s18 = sshll.u32 %s1197_s17, 4  ;;  %p1036_p0 = scmp.ne.s32.totalorder %s1465_s1, %s1035_s21  ;;  %s36_s18 = int_to_ptr.vmem [resolvable:$true] %s35_s18 }
   0x5   :  { %p1039_p1 = scmp.lt.u32.totalorder %s1035_s21, %s1465_s1 }
   0x7   :  { %p1041_p2 = pnand %p1039_p1, %p1036_p0 }
   0x9   :  { %1044 = shalt.err (!%p1041_p2)
}
   0xa   :  { %s1045_s26 = scalar_lea.vmem %s36_s18, 3328  ;;  %p1050_p4 = scmp.lt.s32.totalorder %s36_s18, %s36_s18 }
   0xb   :  { %p1046_p3 = scmp.ne.s32.totalorder %s36_s18, %s1045_s26  ;;  %p1051_p5 = scmp.lt.s32.totalorder %s1045_s26, %s1045_s26 }
   0xd   :  { %p1052_p6 = por %p1051_p5, %p1050_p4 }
   0xf   :  { %p1053_p7 = pnand %p1052_p6, %p1046_p3 }
  0x11   :  { %1056 = shalt.err (!%p1053_p7)
}
  0x12   :  { %s1198_s27 = smov 128   ;;  %s1199_s28 = smov 8  }
  0x13   :  { %41 = dma.hbm_to_vmem [thread:$0]  %s1465_s1, 3328, %s36_s18, [#allocation5], %s1198_s27, %s1198_s27, %s1199_s28  }
  0x14   :  { %s1200_s12 = smov [#allocation7]   ;;  %s1201_s14 = smov [#allocation10]  }
  0x15   :  { %s64_s13 = sshll.u32 %s1200_s12, 4  ;;  %s85_s15 = sshll.u32 %s1201_s14, 4  ;;  %s65_s13 = int_to_ptr.vmem [resolvable:$true] %s64_s13  ;;  %s86_s15 = int_to_ptr.vmem [resolvable:$true] %s85_s15 }
  0x16   :  { %s1057_s19 = scalar_lea.hbm %s1470_s6, 16 }
  0x17   :  { %p1058_p8 = scmp.ne.s32.totalorder %s1470_s6, %s1057_s19  ;;  %p1061_p9 = scmp.lt.u32.totalorder %s1057_s19, %s1470_s6 }
  0x19   :  { %p1063_p10 = pnand %p1061_p9, %p1058_p8 }
  0x1b   :  { %1066 = shalt.err (!%p1063_p10)
}
  0x1c   :  { %s1067_s1 = scalar_lea.vmem %s65_s13, 16  ;;  %s1071_s18 = scalar_lea.vmem %s65_s13, 32 }
  0x1d   :  { %p1068_p11 = scmp.ne.s32.totalorder %s65_s13, %s1067_s1  ;;  %p1072_p12 = scmp.lt.s32.totalorder %s65_s13, %s65_s13 }
  0x1e   :  { %p1073_p13 = scmp.lt.s32.totalorder %s1071_s18, %s1067_s1 }
  0x20   :  { %p1074_p0 = por %p1073_p13, %p1072_p12 }
  0x22   :  { %p1075_p1 = pnand %p1074_p0, %p1068_p11 }
  0x24   :  { %1078 = shalt.err (!%p1075_p1)
}
  0x25   :  { %67 = dma.hbm_to_vmem [thread:$0]  %s1470_s6, 16, %s65_s13, [#allocation8]  }
  0x26   :  { %s1079_s28 = scalar_lea.hbm %s1473_s9, 256 }
  0x27   :  { %p1080_p2 = scmp.ne.s32.totalorder %s1473_s9, %s1079_s28  ;;  %p1083_p3 = scmp.lt.u32.totalorder %s1079_s28, %s1473_s9 }
  0x29   :  { %p1085_p4 = pnand %p1083_p3, %p1080_p2 }
  0x2b   :  { %1088 = shalt.err (!%p1085_p4)
}
  0x2c   :  { %s1089_s16 = scalar_lea.vmem %s86_s15, 256  ;;  %p1094_p6 = scmp.lt.s32.totalorder %s86_s15, %s86_s15 }
  0x2d   :  { %p1090_p5 = scmp.ne.s32.totalorder %s86_s15, %s1089_s16  ;;  %p1095_p7 = scmp.lt.s32.totalorder %s1089_s16, %s1089_s16 }
  0x2f   :  { %p1096_p8 = por %p1095_p7, %p1094_p6 }
  0x31   :  { %p1097_p9 = pnand %p1096_p8, %p1090_p5 }
  0x33   :  { %1100 = shalt.err (!%p1097_p9)
}
  0x34   :  { %s1202_s6 = smov 64   ;;  %s1203_s13 = smov 4  }
  0x35   :  { %91 = dma.hbm_to_vmem [thread:$0]  %s1473_s9, 256, %s86_s15, [#allocation11], %s1202_s6, %s1202_s6, %s1203_s13  }
  0x36   :  { %s1204_s20 = smov [#allocation2]   ;;  %s1205_s22 = smov [#allocation6]  }
  0x37   :  { %s26_s21 = sshll.u32 %s1204_s20, 4  ;;  %s52_s23 = sshll.u32 %s1205_s22, 4  ;;  %s27_s21 = int_to_ptr.vmem [resolvable:$true] %s26_s21  ;;  %s53_s23 = int_to_ptr.vmem [resolvable:$true] %s52_s23 }
  0x38   :  { %s1101_s24 = scalar_lea.hbm %s1464_s0, 256 }
  0x39   :  { %p1102_p10 = scmp.ne.s32.totalorder %s1464_s0, %s1101_s24  ;;  %p1105_p11 = scmp.lt.u32.totalorder %s1101_s24, %s1464_s0 }
  0x3b   :  { %p1107_p12 = pnand %p1105_p11, %p1102_p10 }
  0x3d   :  { %1110 = shalt.err (!%p1107_p12)
}
  0x3e   :  { %s1111_s9 = scalar_lea.vmem %s27_s21, 256  ;;  %p1116_p0 = scmp.lt.s32.totalorder %s27_s21, %s27_s21 }
  0x3f   :  { %p1112_p13 = scmp.ne.s32.totalorder %s27_s21, %s1111_s9  ;;  %p1117_p1 = scmp.lt.s32.totalorder %s1111_s9, %s1111_s9 }
  0x41   :  { %p1118_p2 = por %p1117_p1, %p1116_p0 }
  0x43   :  { %p1119_p3 = pnand %p1118_p2, %p1112_p13 }
  0x45   :  { %1122 = shalt.err (!%p1119_p3)
}
  0x46   :  { %29 = dma.hbm_to_vmem [thread:$0]  %s1464_s0, 256, %s27_s21, [#allocation3]  }
  0x47   :  { %s1123_s14 = scalar_lea.hbm %s1468_s4, 16 }
  0x48   :  { %p1124_p4 = scmp.ne.s32.totalorder %s1468_s4, %s1123_s14  ;;  %p1127_p5 = scmp.lt.u32.totalorder %s1123_s14, %s1468_s4 }
  0x4a   :  { %p1129_p6 = pnand %p1127_p5, %p1124_p4 }
  0x4c   :  { %1132 = shalt.err (!%p1129_p6)
}
  0x4d   :  { %s1133_s19 = scalar_lea.vmem %s53_s23, 16  ;;  %s1137_s20 = scalar_lea.vmem %s53_s23, 32 }
  0x4e   :  { %p1134_p7 = scmp.ne.s32.totalorder %s53_s23, %s1133_s19  ;;  %p1138_p8 = scmp.lt.s32.totalorder %s53_s23, %s53_s23 }
  0x4f   :  { %p1139_p9 = scmp.lt.s32.totalorder %s1137_s20, %s1133_s19 }
  0x51   :  { %p1140_p10 = por %p1139_p9, %p1138_p8 }
  0x53   :  { %p1141_p11 = pnand %p1140_p10, %p1134_p7 }
  0x55   :  { %1144 = shalt.err (!%p1141_p11)
}
  0x56   :  { %55 = dma.hbm_to_vmem [thread:$0]  %s1468_s4, 16, %s53_s23, [#allocation5]  }
  0x57   :  { %s1206_s22 = smov [#allocation9]   ;;  %s1207_s18 = smov [#allocation12]  }
  0x58   :  { %s76_s1 = sshll.u32 %s1206_s22, 4  ;;  %s98_s24 = sshll.u32 %s1207_s18, 4  ;;  %s77_s1 = int_to_ptr.vmem [resolvable:$true] %s76_s1  ;;  %s99_s24 = int_to_ptr.vmem [resolvable:$true] %s98_s24 }
  0x59   :  { %s1145_s27 = scalar_lea.hbm %s1472_s8, 16 }
  0x5a   :  { %p1146_p12 = scmp.ne.s32.totalorder %s1472_s8, %s1145_s27  ;;  %p1149_p13 = scmp.lt.u32.totalorder %s1145_s27, %s1472_s8 }
  0x5c   :  { %p1151_p0 = pnand %p1149_p13, %p1146_p12 }
  0x5e   :  { %1154 = shalt.err (!%p1151_p0)
}
  0x5f   :  { %s1155_s4 = scalar_lea.vmem %s77_s1, 16  ;;  %s1159_s23 = scalar_lea.vmem %s77_s1, 32 }
  0x60   :  { %p1156_p1 = scmp.ne.s32.totalorder %s77_s1, %s1155_s4  ;;  %p1160_p2 = scmp.lt.s32.totalorder %s77_s1, %s77_s1 }
  0x61   :  { %p1161_p3 = scmp.lt.s32.totalorder %s1159_s23, %s1155_s4 }
  0x63   :  { %p1162_p4 = por %p1161_p3, %p1160_p2 }
  0x65   :  { %p1163_p5 = pnand %p1162_p4, %p1156_p1 }
  0x67   :  { %1166 = shalt.err (!%p1163_p5)
}
  0x68   :  { %79 = dma.hbm_to_vmem [thread:$0]  %s1472_s8, 16, %s77_s1, [#allocation8]  }
  0x69   :  { %s1167_s6 = scalar_lea.hbm %s1474_s10, 16 }
  0x6a   :  { %p1168_p6 = scmp.ne.s32.totalorder %s1474_s10, %s1167_s6  ;;  %p1171_p7 = scmp.lt.u32.totalorder %s1167_s6, %s1474_s10 }
  0x6c   :  { %p1173_p8 = pnand %p1171_p7, %p1168_p6 }
  0x6e   :  { %1176 = shalt.err (!%p1173_p8)
}
  0x6f   :  { %s1177_s0 = scalar_lea.vmem %s99_s24, 16  ;;  %s1181_s21 = scalar_lea.vmem %s99_s24, 32 }
  0x70   :  { %p1178_p9 = scmp.ne.s32.totalorder %s99_s24, %s1177_s0  ;;  %p1182_p10 = scmp.lt.s32.totalorder %s99_s24, %s99_s24 }
  0x71   :  { %p1183_p11 = scmp.lt.s32.totalorder %s1181_s21, %s1177_s0 }
  0x73   :  { %p1184_p12 = por %p1183_p11, %p1182_p10 }
  0x75   :  { %p1185_p13 = pnand %p1184_p12, %p1178_p9 }
  0x77   :  { %1188 = shalt.err (!%p1185_p13)
}
  0x78   :  { %101 = dma.hbm_to_vmem [thread:$0]  %s1474_s10, 16, %s99_s24, [#allocation11]  }
  0x79   :  { %1189 = dma.done.wait [#allocation3], 256  }
  0x7a   :  { %1190 = vsyncadd [#allocation3], 4294967040 }
  0x7b   :  { %1191 = dma.done.wait [#allocation5], 3344  }
  0x7c   :  { %1192 = vsyncadd [#allocation5], 4294963952 }
  0x7d   :  { %1193 = dma.done.wait [#allocation8], 32  }
  0x7e   :  { %1194 = vsyncadd [#allocation8], 4294967264 }
  0x7f   :  { %1195 = dma.done.wait [#allocation11], 272  }
  0x80   :  { %1196 = vsyncadd [#allocation11], 4294967024  ;;  %v964_v0 = vld [vmem:[#allocation4 + $0x4] ss:$8 sps:$4 sm:$0xff]   ;;  %v966_v1 = vld [vmem:[#allocation4] ss:$8 sps:$4 sm:$0xff]   ;;  %v156_v47 = vlaneseq }
  0x81   :  { %300 = vmatprep.subr.bf16.mxu0 %v964_v0  ;;  %v967_v2 = vld [vmem:[#allocation4 + $0x14] ss:$8 sps:$4 sm:$0xff]   ;;  %v969_v3 = vld [vmem:[#allocation4 + $0x10] ss:$8 sps:$4 sm:$0xff]   ;;  %v970_v4 = vld [vmem:[#allocation4 + $0x24] ss:$8 sps:$4 sm:$0xff]  }
  0x82   :  { %301 = vmatpush1.bf16.msra.mxu0 %v966_v1  ;;  %v972_v5 = vld [vmem:[#allocation4 + $0x20] ss:$8 sps:$4 sm:$0xff]   ;;  %v973_v6 = vld [vmem:[#allocation4 + $0x34] ss:$8 sps:$4 sm:$0xff]   ;;  %v975_v7 = vld [vmem:[#allocation4 + $0x30] ss:$8 sps:$4 sm:$0xff]  }
  0x83   :  { %302 = vmatprep.subr.bf16.mxu0 %v967_v2  ;;  %v976_v8 = vld [vmem:[#allocation4 + $0x44] ss:$8 sps:$4 sm:$0xff]   ;;  %v978_v9 = vld [vmem:[#allocation4 + $0x40] ss:$8 sps:$4 sm:$0xff]   ;;  %v979_v10 = vld [vmem:[#allocation4 + $0x54] ss:$8 sps:$4 sm:$0xff]  }
  0x84   :  { %v981_v11 = vld [vmem:[#allocation4 + $0x50] ss:$8 sps:$4 sm:$0xff]   ;;  %vm296_vm0 = vcmask 654336   ;;  %v982_v13 = vld [vmem:[#allocation4 + $0x64] ss:$8 sps:$4 sm:$0xff]   ;;  %v1208_v46 = vmov 0.0  }
  0x85   :  { %v125_v12 = vld [vmem:[#allocation2 + $0x8] sm:$0xff]  ;;  %v1003_v15 = vld [vmem:[%s1467_s3 + $0x40] sm:$0xff]   ;;  %v984_v18 = vld [vmem:[#allocation4 + $0x60] ss:$8 sps:$4 sm:$0xff]   ;;  %v157_v48 = vshrl.u32 %v156_v47, 7  ;;  %vm1209_vm3 = vmmov 0  }
  0x86   :  { %303 = vmatpush1.bf16.msra.mxu0 %v969_v3  ;;  %v127_v14 = vpack.c.bf16 %v125_v12, %v125_v12  ;;  %v1004_v16 = vld [vmem:[%s1467_s3] sm:$0xff]   ;;  %v1005_v17 = vld [vmem:[%s1467_s3 + $0x48] sm:$0xff]   ;;  %872 = vmatprep.subr.bf16.mxu1 %v1003_v15  ;;  %v1007_v20 = vld [vmem:[%s1467_s3 + $0x50] sm:$0xff]   ;;  %vm682_vm6 = vcmask 523264   ;;  %vm753_vm8 = vcmask 261120  }
  0x87   :  { %304 = vmatprep.subr.bf16.mxu0 %v970_v4  ;;  %873 = vmatpush3.bf16.msra.mxu1 %v1004_v16  ;;  %v1006_v19 = vld [vmem:[%s1467_s3 + $0x8] sm:$0xff]   ;;  %v1008_v23 = vld [vmem:[%s1467_s3 + $0x10] sm:$0xff]   ;;  %v1009_v24 = vld [vmem:[%s1467_s3 + $0x58] sm:$0xff]   ;;  %v158_v49 = vsub.s32 0, %v157_v48  ;;  %v162_v51 = vsub.s32 1, %v157_v48 }
  0x88   :  { %835 = vmatprep.mubr.msk.bf16.mxu0 %vm296_vm0, %v127_v14  ;;  %874 = vmatprep.subr.bf16.mxu1 %v1005_v17  ;;  %v985_v21 = vld [vmem:[#allocation4 + $0x74] ss:$8 sps:$4 sm:$0xff]   ;;  %v987_v22 = vld [vmem:[#allocation4 + $0x70] ss:$8 sps:$4 sm:$0xff]   ;;  %v988_v25 = vld [vmem:[#allocation4 + $0x84] ss:$8 sps:$4 sm:$0xff]  }
  0x89   :  { %v990_v26 = vld [vmem:[#allocation4 + $0x80] ss:$8 sps:$4 sm:$0xff]   ;;  %v991_v28 = vld [vmem:[#allocation4 + $0x94] ss:$8 sps:$4 sm:$0xff]   ;;  %v993_v31 = vld [vmem:[#allocation4 + $0x90] ss:$8 sps:$4 sm:$0xff]  }
  0x8a   :  { %305 = vmatpush1.bf16.msra.mxu0 %v972_v5  ;;  %v1010_v27 = vld [vmem:[%s1467_s3 + $0x18] sm:$0xff]   ;;  %v1011_v29 = vld [vmem:[%s1467_s3 + $0x60] sm:$0xff]   ;;  %v1013_v32 = vld [vmem:[%s1467_s3 + $0x68] sm:$0xff]  }
  0x8b   :  { %306 = vmatprep.subr.bf16.mxu0 %v973_v6  ;;  %875 = vmatpush3.bf16.msra.mxu1 %v1006_v19  ;;  %v1012_v30 = vld [vmem:[%s1467_s3 + $0x20] sm:$0xff]   ;;  %v994_v33 = vld [vmem:[#allocation4 + $0xa4] ss:$8 sps:$4 sm:$0xff]   ;;  %v1014_v34 = vld [vmem:[%s1467_s3 + $0x28] sm:$0xff]  }
  0x8c   :  { %876 = vmatprep.subr.bf16.mxu1 %v1007_v20  ;;  %v996_v35 = vld [vmem:[#allocation4 + $0xa0] ss:$8 sps:$4 sm:$0xff]   ;;  %v997_v36 = vld [vmem:[#allocation4 + $0xb4] ss:$8 sps:$4 sm:$0xff]   ;;  %v999_v37 = vld [vmem:[#allocation4 + $0xb0] ss:$8 sps:$4 sm:$0xff]  }
  0x8d   :  { %v1000_v38 = vld [vmem:[#allocation4 + $0xc4] ss:$8 sps:$4 sm:$0xff]   ;;  %v1002_v39 = vld [vmem:[#allocation4 + $0xc0] ss:$8 sps:$4 sm:$0xff]   ;;  %v124_v40 = vld [vmem:[#allocation2] sm:$0xff] }
  0x8e   :  { %307 = vmatpush1.bf16.msra.mxu0 %v975_v7  ;;  %v126_v41 = vpack.c.bf16 %v124_v40, %v124_v40  ;;  %v1015_v42 = vld [vmem:[%s1467_s3 + $0x70] sm:$0xff]   ;;  %v1017_v44 = vld [vmem:[%s1467_s3 + $0x78] sm:$0xff]   ;;  %v154_v50 = vld [vmem:[%s1466_s2] sm:$0x3] }
  0x8f   :  { %308 = vmatprep.subr.bf16.mxu0 %v976_v8  ;;  %877 = vmatpush3.bf16.msra.mxu1 %v1008_v23  ;;  %v1016_v43 = vld [vmem:[%s1467_s3 + $0x30] sm:$0xff]   ;;  %v1018_v45 = vld [vmem:[%s1467_s3 + $0x38] sm:$0xff]   ;;  %v159_v52 = vrot.slane %v154_v50, %v158_v49  ;;  %v163_v53 = vrot.slane %v154_v50, %v162_v51  ;;  %v1019_v1 = vld [vmem:[%s1469_s5] sm:$0xff]  }
  0x90   :  { %878 = vmatprep.subr.bf16.mxu1 %v1009_v24  ;;  %v1020_v3 = vld [vmem:[%s1469_s5 + $0x8] sm:$0xff]   ;;  %v1021_v4 = vld [vmem:[%s1469_s5 + $0x10] sm:$0xff]   ;;  %v1022_v5 = vld [vmem:[%s1469_s5 + $0x18] sm:$0xff]  }
  0x91   :  { %v1023_v6 = vld [vmem:[%s1469_s5 + $0x20] sm:$0xff]   ;;  %v1024_v7 = vld [vmem:[%s1469_s5 + $0x28] sm:$0xff]   ;;  %v1025_v8 = vld [vmem:[%s1469_s5 + $0x30] sm:$0xff]  }
  0x92   :  { %309 = vmatpush1.bf16.msra.mxu0 %v978_v9  ;;  %v1026_v9 = vld [vmem:[%s1469_s5 + $0x38] sm:$0xff]   ;;  %v853_v24 = vld [vmem:[#allocation7] ss:$0 sm:$0xff] }
  0x93   :  { %310 = vmatprep.subr.bf16.mxu0 %v979_v10  ;;  %879 = vmatpush3.bf16.msra.mxu1 %v1010_v27  ;;  %v1027_v10 = vld [vmem:[%s1471_s7] sm:$0xff]   ;;  %v1030_v23 = vld [vmem:[%s1471_s7 + $0x18] sm:$0xff]  }
  0x94   :  { %880 = vmatprep.subr.bf16.mxu1 %v1011_v29 }
  0x96   :  { %311 = vmatpush1.bf16.msra.mxu0 %v981_v11  ;;  %v1028_v11 = vld [vmem:[%s1471_s7 + $0x8] sm:$0xff]  }
  0x97   :  { %312 = vmatprep.subr.bf16.mxu0 %v982_v13  ;;  %881 = vmatpush3.bf16.msra.mxu1 %v1012_v30  ;;  %v836_v13 = vld [vmem:[#allocation6] ss:$0 sm:$0xff] }
  0x98   :  { %882 = vmatprep.subr.bf16.mxu1 %v1013_v32 }
  0x9a   :  { %313 = vmatpush1.bf16.msra.mxu0 %v984_v18 }
  0x9b   :  { %314 = vmatprep.subr.bf16.mxu0 %v985_v21  ;;  %883 = vmatpush3.bf16.msra.mxu1 %v1014_v34  ;;  %v1032_v34 = vld [vmem:[#allocation10 + $0x8] sm:$0xff]  }
  0x9c   :  { %884 = vmatprep.subr.bf16.mxu1 %v1015_v42 }
  0x9e   :  { %315 = vmatpush1.bf16.msra.mxu0 %v987_v22  ;;  %v1029_v22 = vld [vmem:[%s1471_s7 + $0x10] sm:$0xff]  }
  0x9f   :  { %316 = vmatprep.subr.bf16.mxu0 %v988_v25  ;;  %885 = vmatpush3.bf16.msra.mxu1 %v1016_v43 }
  0xa0   :  { %886 = vmatprep.subr.bf16.mxu1 %v1017_v44  ;;  %v868_v44 = vld [vmem:[#allocation12] ss:$0 sm:$0xff] }
  0xa2   :  { %317 = vmatpush1.bf16.msra.mxu0 %v990_v26 }
  0xa3   :  { %318 = vmatprep.subr.bf16.mxu0 %v991_v28  ;;  %887 = vmatpush3.bf16.msra.mxu1 %v1018_v45 }
  0xa4   :  { %911 = vmatprep.subr.bf16.mxu1 %v1208_v46 }
  0xa6   :  { %319 = vmatpush1.bf16.msra.mxu0 %v993_v31 }
  0xa7   :  { %320 = vmatprep.subr.bf16.mxu0 %v994_v33  ;;  %v1031_v33 = vld [vmem:[#allocation10] sm:$0xff]  }
  0xaa   :  { %321 = vmatpush1.bf16.msra.mxu0 %v996_v35  ;;  %v862_v35 = vld [vmem:[#allocation9] ss:$0 sm:$0xff] }
  0xab   :  { %322 = vmatprep.subr.bf16.mxu0 %v997_v36 }
  0xae   :  { %323 = vmatpush1.bf16.msra.mxu0 %v999_v37 }
  0xaf   :  { %324 = vmatprep.subr.bf16.mxu0 %v1000_v38 }
  0xb2   :  { %325 = vmatpush1.bf16.msra.mxu0 %v1002_v39 }
  0xb3   :  { %931 = vmatprep.subr.bf16.mxu0 %v1208_v46 }
  0xb5   :  { %333 = vmatmul.mubr.bf16.vlgmr.msra.gmra.mrb[0].mxu0 %v126_v41 }
  0xb6   :  { %939 = vmatprep.mubr.msk.bf16.mxu0 %vm1209_vm3, %v1208_v46  ;;  %932 = vmatpush3.bf16.msra.mxu0 %v1027_v10 }
  0xb7   :  { %933 = vmatprep.subr.bf16.mxu0 %v1208_v46 }
  0xba   :  { %934 = vmatpush3.bf16.msra.mxu0 %v1028_v11 }
  0xbb   :  { %935 = vmatprep.subr.bf16.mxu0 %v1208_v46 }
  0xbe   :  { %936 = vmatpush3.bf16.msra.mxu0 %v1029_v22 }
  0xbf   :  { %937 = vmatprep.subr.bf16.mxu0 %v1208_v46 }
  0xc2   :  { %938 = vmatpush3.bf16.msra.mxu0 %v1030_v23 }
 0x188   :  { %v334_v54 = vpop.f32.mrb[0].mxu0 }
 0x189   :  { %v335_v55 = vadd.f32 %v334_v54, %v159_v52  ;;  %v336_v56 = vpop.f32.mrb[1].mxu0 }
 0x18a   :  { %v337_v57 = vadd.f32 %v336_v56, %v163_v53  ;;  %v338_v58 = vpop.f32.mrb[2].mxu0 }
 0x18b   :  { %vm341_vm1 = vcmp.gt.f32.partialorder %v335_v55, 0.0  ;;  %v343_v59 = vmul.f32 0.01, %v335_v55  ;;  %v339_v60 = vpop.f32.mrb[3].mxu0 }
 0x18c   :  { %vm342_vm2 = vcmp.gt.f32.partialorder %v337_v57, 0.0  ;;  %v344_v61 = vmul.f32 0.01, %v337_v57 }
 0x18d   :  { %v345_v62 = vsel %vm341_vm1, %v335_v55, %v343_v59 }
 0x18e   :  { %v346_v63 = vsel %vm342_vm2, %v337_v57, %v344_v61  ;;  %v347_v2 = vpack.c.bf16 %v345_v62, %v345_v62 }
 0x18f   :  { %v348_v0 = vpack.c.bf16 %v346_v63, %v346_v63 }
 0x191   :  { %516 = vmatprep.mubr.bf16.mxu1 %v348_v0 }
 0x192   :  { %517 = vmatmul.mubr.bf16.vlgmr.msra.gmra.mrb[0].mxu1 %v347_v2 }
 0x193   :  { %912 = vmatpush3.bf16.msra.mxu1 %v1019_v1  ;;  %927 = vmatprep.mubr.msk.bf16.mxu1 %vm1209_vm3, %v1208_v46 }
 0x194   :  { %913 = vmatprep.subr.bf16.mxu1 %v1208_v46 }
 0x197   :  { %914 = vmatpush3.bf16.msra.mxu1 %v1020_v3 }
 0x198   :  { %915 = vmatprep.subr.bf16.mxu1 %v1208_v46 }
 0x19b   :  { %916 = vmatpush3.bf16.msra.mxu1 %v1021_v4 }
 0x19c   :  { %917 = vmatprep.subr.bf16.mxu1 %v1208_v46 }
 0x19f   :  { %918 = vmatpush3.bf16.msra.mxu1 %v1022_v5 }
 0x1a0   :  { %919 = vmatprep.subr.bf16.mxu1 %v1208_v46 }
 0x1a3   :  { %920 = vmatpush3.bf16.msra.mxu1 %v1023_v6 }
 0x1a4   :  { %921 = vmatprep.subr.bf16.mxu1 %v1208_v46 }
 0x1a7   :  { %922 = vmatpush3.bf16.msra.mxu1 %v1024_v7 }
 0x1a8   :  { %923 = vmatprep.subr.bf16.mxu1 %v1208_v46 }
 0x1ab   :  { %924 = vmatpush3.bf16.msra.mxu1 %v1025_v8 }
 0x1ac   :  { %925 = vmatprep.subr.bf16.mxu1 %v1208_v46 }
 0x1af   :  { %926 = vmatpush3.bf16.msra.mxu1 %v1026_v9 }
 0x1b0   :  { %943 = vmatprep.subr.bf16.mxu1 %v1208_v46 }
 0x265   :  { %v888_v12 = vpop.f32.mrb[0].mxu1 }
 0x266   :  { %v889_v14 = vpop.f32.mrb[1].mxu1 }
 0x267   :  { %v890_v15 = vadd.f32 %v889_v14, %v888_v12  ;;  %v891_v16 = vpop.f32.mrb[2].mxu1 }
 0x268   :  { %v892_v17 = vpop.f32.mrb[3].mxu1 }
 0x269   :  { %v519_v18 = vadd.f32 %v890_v15, %v836_v13 }
 0x26b   :  { %vm524_vm4 = vcmp.gt.f32.partialorder %v519_v18, 0.0  ;;  %v525_v19 = vmul.f32 0.01, %v519_v18 }
 0x26d   :  { %v526_v20 = vsel %vm524_vm4, %v519_v18, %v525_v19 }
 0x26e   :  { %v527_v21 = vpack.c.bf16 %v526_v20, %v526_v20 }
 0x270   :  { %928 = vmatmul.mubr.bf16.vlgmr.msra.gmra.mrb[4].mxu1 %v527_v21 }
 0x271   :  { %947 = vmatprep.mubr.msk.bf16.mxu1 %vm1209_vm3, %v1208_v46  ;;  %944 = vmatpush3.bf16.msra.mxu1 %v1031_v33 }
 0x272   :  { %945 = vmatprep.subr.bf16.mxu1 %v1208_v46 }
 0x275   :  { %946 = vmatpush3.bf16.msra.mxu1 %v1032_v34 }
 0x343   :  { %v633_v25 = vpop.f32.mrb[4].mxu1 }
 0x344   :  { %v634_v26 = vadd.f32 %v853_v24, %v633_v25  ;;  %v929_v27 = vpop.f32.mrb[5].mxu1 }
 0x345   :  { %v636_v28 = vpop.f32.mrb[6].mxu1 }
 0x346   :  { %vm639_vm5 = vcmp.gt.f32.partialorder %v634_v26, 0.0  ;;  %v640_v29 = vmul.f32 0.01, %v634_v26  ;;  %v930_v30 = vpop.f32.mrb[7].mxu1 }
 0x348   :  { %v641_v31 = vsel %vm639_vm5, %v634_v26, %v640_v29 }
 0x349   :  { %v642_v32 = vpack.c.bf16 %v641_v31, %v641_v31 }
 0x34b   :  { %940 = vmatmul.mubr.msk.bf16.vlgmr.msra.gmra.mrb[4].mxu0 %vm682_vm6, %v642_v32 }
 0x41e   :  { %v720_v36 = vpop.f32.mrb[4].mxu0 }
 0x41f   :  { %v721_v37 = vadd.f32 %v862_v35, %v720_v36  ;;  %v941_v38 = vpop.f32.mrb[5].mxu0 }
 0x420   :  { %v723_v39 = vpop.f32.mrb[6].mxu0 }
 0x421   :  { %vm726_vm7 = vcmp.gt.f32.partialorder %v721_v37, 0.0  ;;  %v727_v40 = vmul.f32 0.01, %v721_v37  ;;  %v942_v41 = vpop.f32.mrb[7].mxu0 }
 0x423   :  { %v728_v42 = vsel %vm726_vm7, %v721_v37, %v727_v40 }
 0x424   :  { %v729_v43 = vpack.c.bf16 %v728_v42, %v728_v42 }
 0x426   :  { %948 = vmatmul.mubr.msk.bf16.vlgmr.msra.gmra.mrb[8].mxu1 %vm753_vm8, %v729_v43 }
 0x4f9   :  { %v791_v45 = vpop.f32.mrb[8].mxu1 }
 0x4fa   :  { %v792_v47 = vadd.f32 %v868_v44, %v791_v45  ;;  %v949_v48 = vpop.f32.mrb[9].mxu1 }
 0x4fb   :  { %v794_v49 = vpop.f32.mrb[10].mxu1 }
 0x4fc   :  { %1033 = vtanh.f32 %v792_v47  ;;  %v950_v46 = vpop.f32.mrb[11].mxu1 }
 0x506   :  { %v1034_v50 = vpop.eup %1033 }
 0x507   :  { %v798_v51 = vmul.f32 5.0, %v1034_v50 }
 0x509   :  { %v799_v52 = vpack.c.bf16 %v798_v51, %v798_v51 }
 0x50b   :  { %800 = vst [vmem:[%s1475_s11] sm:$0xf] %v799_v52 }
 0x50c   :  { %805 = vsyncpa [#allocation3], 1 }
 0x50d   :  { %806 = vsyncpa [#allocation5], 1 }
 0x50e   :  { %807 = vsyncpa [#allocation8], 1 }
 0x50f   :  { %808 = vsyncpa [#allocation11], 1 }

</bundles_post_ra>
